<compile_context>
chip_gen: v6e
topology: v6e:2x2x1
jax: 0.10.0
libtpu: 0.0.40
codegen_flags: <defaults>
</compile_context>

<pallas_src>
import functools

import jax
import jax.numpy as jnp
import numpy as np
from jax import lax
from jax.experimental import pallas as pl
from jax.experimental.pallas import tpu as pltpu


def _pick_block_rows(n, max_rows):
    """Largest divisor of n <= max_rows, preferring multiples of 16 (bf16
    sublane packing), then multiples of 8; falls back to n itself."""
    best = None
    for t in range(min(max_rows, n), 0, -1):
        if n % t:
            continue
        if t % 16 == 0:
            return t
        if best is None and t % 8 == 0:
            best = t
    return best if best is not None else n


def _vmem_limit_bytes():
    """Derive the VMEM budget from the actual chip (64 MiB/TC on v7x,
    128 MiB on v5e/v6e), leaving ~12.5% headroom for Mosaic scratch."""
    cap = 128 * 1024 * 1024
    try:
        info_cap = int(pltpu.get_tpu_info().vmem_capacity_bytes)
        if info_cap > 0:
            cap = info_cap
    except Exception:
        pass
    return int(min(cap - cap // 8, 128 * 1024 * 1024))


def _l2_normalize(x):
    # F.normalize(dim=1): x / max(||x||, 1e-12) == x * rsqrt(max(||x||^2, 1e-24))
    ssq = jnp.sum(x * x, axis=1, keepdims=True)
    return x * lax.rsqrt(jnp.maximum(ssq, 1e-24))


def _norm_pos_kernel(x_ref, xp_ref, xn_ref, pos_ref, *, pad_cols):
    """Normalize a row block + its bsz-shifted partner block; emit bf16 xn
    (zero-padded feature dim) and exact-f32 positives."""
    xn = _l2_normalize(x_ref[...].astype(jnp.float32))
    xpn = _l2_normalize(xp_ref[...].astype(jnp.float32))
    pos_ref[...] = jnp.sum(xn * xpn, axis=1, keepdims=True)
    if pad_cols:
        xn = jnp.concatenate(
            [xn, jnp.zeros((xn.shape[0], pad_cols), jnp.float32)], axis=1)
    xn_ref[...] = xn.astype(xn_ref.dtype)


def _norm_pos_single_block_kernel(x_ref, xn_ref, pos_ref, *, pad_cols, bsz):
    """Fallback (bsz has no multiple-of-8 divisor): one block holds all rows,
    the partner rows are a static row rotation of the same block."""
    xn = _l2_normalize(x_ref[...].astype(jnp.float32))
    xpn = jnp.concatenate([xn[bsz:], xn[:bsz]], axis=0)
    pos_ref[...] = jnp.sum(xn * xpn, axis=1, keepdims=True)
    if pad_cols:
        xn = jnp.concatenate(
            [xn, jnp.zeros((xn.shape[0], pad_cols), jnp.float32)], axis=1)
    xn_ref[...] = xn.astype(xn_ref.dtype)


def _logits_kernel(xn_all_ref, pos_ref, out_ref, *, bsz, inv_temp, tm):
    """Similarity row block -> fused NT-Xent compaction, lane-dense (tm, n)."""
    n = xn_all_ref.shape[0]
    r0 = pl.multiple_of(pl.program_id(0) * tm, tm)

    # The lhs rows are already resident in the (n, dp) rhs buffer: slice them
    # out instead of streaming a second copy from HBM.
    lhs = xn_all_ref[pl.ds(r0, tm), :]                          # (tm, dp) bf16

    # MXU: contract the last dims of both operands (== lhs @ rhs.T), f32 acc.
    sim = lax.dot_general(
        lhs, xn_all_ref[...],
        dimension_numbers=(((1,), (1,)), ((), ())),
        preferred_element_type=jnp.float32)                     # (tm, n)
    sim = sim * inv_temp
    pos = pos_ref[...] * inv_temp                               # (tm, 1)

    # For global row r with a = r % bsz, b = a + bsz (the two masked columns):
    #   logits[r, 0] = pos
    #   logits[r, k] = sim[r, k-1]   1 <= k <= a
    #                  sim[r, k]     a <  k <  b
    #                  sim[r, k+1]   k >= b       (k = n-1 is junk, sliced off)
    sim_km1 = jnp.concatenate([pos, sim[:, : n - 1]], axis=1)   # pos folded in col 0
    sim_kp1 = pltpu.roll(sim, shift=n - 1, axis=1)              # sim[r, k+1] via XLU

    col = lax.broadcasted_iota(jnp.int32, (1, n), 1)
    rvec = r0 + lax.broadcasted_iota(jnp.int32, (tm, 1), 0)
    a = jnp.where(rvec < bsz, rvec, rvec - bsz)                 # row % bsz, (tm, 1)
    b = a + bsz

    out_ref[...] = jnp.where(col <= a, sim_km1,
                             jnp.where(col < b, sim, sim_kp1))


def contrastive_loss(features, bsz, temperature=0.07,
                     block_rows=None, norm_block_rows=None):
    """Pallas implementation of ContrastiveLoss.forward.

    Returns (logits, labels): logits (2*bsz, 2*bsz-1) float32, labels
    (2*bsz,) int32 zeros.
    """
    n, d = features.shape
    assert n == 2 * bsz, "features must have 2*bsz rows"

    dp = ((d + 127) // 128) * 128          # fused zero-pad of the contraction dim
    pad_cols = dp - d
    itemsize = jnp.dtype(features.dtype).itemsize
    vmem_limit = _vmem_limit_bytes()

    # ---- kernel A: fused cast + L2 normalize + pad + exact-f32 positives ----
    if bsz >= 8 and bsz % 8 == 0:
        tm_a = _pick_block_rows(
            bsz, 512 if norm_block_rows is None else norm_block_rows)
        nblk_a = n // tm_a
        poff = bsz // tm_a                  # partner block offset: r <-> (r+bsz)%n
        xn, pos = pl.pallas_call(
            functools.partial(_norm_pos_kernel, pad_cols=pad_cols),
            out_shape=(jax.ShapeDtypeStruct((n, dp), jnp.bfloat16),
                       jax.ShapeDtypeStruct((n, 1), jnp.float32)),
            grid=(nblk_a,),
            in_specs=[pl.BlockSpec((tm_a, d), lambda i: (i, 0)),
                      pl.BlockSpec((tm_a, d), lambda i: ((i + poff) % nblk_a, 0))],
            out_specs=(pl.BlockSpec((tm_a, dp), lambda i: (i, 0)),
                       pl.BlockSpec((tm_a, 1), lambda i: (i, 0))),
            compiler_params=pltpu.CompilerParams(
                dimension_semantics=("parallel",),
                vmem_limit_bytes=vmem_limit),
            cost_estimate=pl.CostEstimate(
                flops=8 * n * d, transcendentals=2 * n,
                bytes_accessed=2 * n * d * itemsize + n * dp * 2 + n * 4),
        )(features, features)
    else:
        # Rare fallback (bsz not a multiple of 8): single full-height block.
        xn, pos = pl.pallas_call(
            functools.partial(_norm_pos_single_block_kernel,
                              pad_cols=pad_cols, bsz=bsz),
            out_shape=(jax.ShapeDtypeStruct((n, dp), jnp.bfloat16),
                       jax.ShapeDtypeStruct((n, 1), jnp.float32)),
            grid=(1,),
            in_specs=[pl.BlockSpec((n, d), lambda i: (0, 0))],
            out_specs=(pl.BlockSpec((n, dp), lambda i: (0, 0)),
                       pl.BlockSpec((n, 1), lambda i: (0, 0))),
            compiler_params=pltpu.CompilerParams(
                dimension_semantics=("arbitrary",),
                vmem_limit_bytes=vmem_limit),
        )(features)

    # ---- kernel B: tiled similarity + fused NT-Xent compaction --------------
    tm = _pick_block_rows(n, 256 if block_rows is None else block_rows)
    # TODO(synk): for very large N with no multiple-of-8 divisor this degrades
    # to a single full-height block; a cdiv grid + masked tail (and a column
    # grid axis on v7x's 64 MiB VMEM) would be the next step.
    grid = (n // tm,)
    logits_full = pl.pallas_call(
        functools.partial(_logits_kernel, bsz=bsz,
                          inv_temp=1.0 / float(temperature), tm=tm),
        out_shape=jax.ShapeDtypeStruct((n, n), jnp.float32),
        grid=grid,
        in_specs=[
            # Constant-index resident rhs: bf16 + single-buffered (nothing to
            # prefetch, halves the largest VMEM allocation).
            pl.BlockSpec((n, dp), lambda i: (0, 0),
                         pipeline_mode=pl.Buffered(1)),
            pl.BlockSpec((tm, 1), lambda i: (i, 0)),
        ],
        # Lane-dense output block of width n; the odd (n-1) logits width is
        # sliced once in the wrapper instead of masking every kernel store.
        out_specs=pl.BlockSpec((tm, n), lambda i: (i, 0)),
        compiler_params=pltpu.CompilerParams(
            dimension_semantics=("parallel",),
            vmem_limit_bytes=vmem_limit),
        cost_estimate=pl.CostEstimate(
            flops=2 * n * n * dp, transcendentals=0,
            bytes_accessed=n * dp * 2 + n * 4 + n * n * 4),
    )(xn, pos)

    # TODO(synk): emit bf16 logits if the downstream CE loss tolerates it
    # (halves the dominant HBM writeback stream).
    logits = logits_full[:, : n - 1]
    # TODO(synk): PyTorch returns int64 labels; int32 used here (JAX x64 off).
    labels = jnp.zeros((n,), dtype=jnp.int32)
    return logits, labels


def _reference_f64(features, bsz, temperature=0.07):
    """Exact float64 numpy reference mirroring the PyTorch module."""
    x = np.asarray(features, dtype=np.float64)
    n = 2 * bsz
    lbl = np.concatenate([np.arange(bsz), np.arange(bsz)])
    lab_mat = (lbl[None, :] == lbl[:, None]).astype(np.float64)
    xn = x / np.maximum(np.linalg.norm(x, axis=1, keepdims=True), 1e-12)
    sim = xn @ xn.T
    eye = np.eye(n, dtype=bool)
    lab_nd = lab_mat[~eye].reshape(n, -1)
    sim_nd = sim[~eye].reshape(n, -1)
    pos = sim_nd[lab_nd.astype(bool)].reshape(n, -1)
    neg = sim_nd[~lab_nd.astype(bool)].reshape(n, -1)
    logits = np.concatenate([pos, neg], axis=1) / temperature
    labels = np.zeros((n,), dtype=np.int64)
    return logits, labels


if __name__ == "__main__":
    bsz = 64        # N = 128 rows -> 4 row blocks of 32: exercises the tiled grid
    feat_dim = 48   # not a multiple of 128 -> exercises the fused padding path
    key = jax.random.PRNGKey(0)
    features = jax.random.normal(key, (2 * bsz, feat_dim), dtype=jnp.float32)

    logits, labels = contrastive_loss(features, bsz, temperature=0.07,
                                      block_rows=32)
    jax.block_until_ready(logits)
    jax.block_until_ready(labels)

    ref_logits, ref_labels = _reference_f64(features, bsz, temperature=0.07)

    # Negatives go through bf16 xn + the MXU's bf16 pass -> loose tolerance.
    np.testing.assert_allclose(np.asarray(logits), ref_logits,
                               rtol=2e-2, atol=5e-2)
    # Positives (column 0) stay on the exact f32 VPU path -> much tighter.
    np.testing.assert_allclose(np.asarray(logits)[:, 0], ref_logits[:, 0],
                               rtol=2e-3, atol=1e-3)

    assert logits.shape == (2 * bsz, 2 * bsz - 1)
    assert labels.shape == (2 * bsz,)
    assert np.all(np.asarray(labels) == 0)

    print("KERNEL_OK")
</pallas_src>

<mosaic_0001>
module attributes {stable_mosaic.version = 11 : i64} {
  func.func @_norm_pos_kernel(%arg0: i32, %arg1: memref<64x48xf32, #tpu.memory_space<vmem>>, %arg2: memref<64x48xf32, #tpu.memory_space<vmem>>, %arg3: memref<64x128xbf16, #tpu.memory_space<vmem>>, %arg4: memref<64x1xf32, #tpu.memory_space<vmem>>) attributes {dimension_semantics = [#tpu.dimension_semantics<parallel>], iteration_bounds = array<i64: 2>, scalar_prefetch = 0 : i64, scratch_operands = 0 : i64, tpu.core_type = #tpu.core_type<tc>, window_params = [{transform_indices = @transform_0, window_bounds = array<i64: 64, 48>}, {transform_indices = @transform_1, window_bounds = array<i64: 64, 48>}, {transform_indices = @transform_2, window_bounds = array<i64: 64, 128>}, {transform_indices = @transform_3, window_bounds = array<i64: 64, 1>}]} {
    %c0 = arith.constant 0 : index
    %c0_0 = arith.constant 0 : index
    %0 = vector.load %arg1[%c0, %c0_0] : memref<64x48xf32, #tpu.memory_space<vmem>>, vector<64x48xf32>
    %1 = arith.mulf %0, %0 : vector<64x48xf32>
    %cst = arith.constant dense<0.000000e+00> : vector<64xf32>
    %2 = vector.multi_reduction <add>, %1, %cst [1] : vector<64x48xf32> to vector<64xf32>
    %3 = vector.shape_cast %2 : vector<64xf32> to vector<64x1xf32>
    %cst_1 = arith.constant 1.000000e-24 : f32
    %4 = vector.broadcast %cst_1 : f32 to vector<64x1xf32>
    %5 = arith.maximumf %3, %4 : vector<64x1xf32>
    %6 = math.rsqrt %5 : vector<64x1xf32>
    %7 = vector.broadcast %6 : vector<64x1xf32> to vector<64x48xf32>
    %8 = arith.mulf %0, %7 : vector<64x48xf32>
    %c0_2 = arith.constant 0 : index
    %c0_3 = arith.constant 0 : index
    %9 = vector.load %arg2[%c0_2, %c0_3] : memref<64x48xf32, #tpu.memory_space<vmem>>, vector<64x48xf32>
    %10 = arith.mulf %9, %9 : vector<64x48xf32>
    %cst_4 = arith.constant dense<0.000000e+00> : vector<64xf32>
    %11 = vector.multi_reduction <add>, %10, %cst_4 [1] : vector<64x48xf32> to vector<64xf32>
    %12 = vector.shape_cast %11 : vector<64xf32> to vector<64x1xf32>
    %cst_5 = arith.constant 1.000000e-24 : f32
    %13 = vector.broadcast %cst_5 : f32 to vector<64x1xf32>
    %14 = arith.maximumf %12, %13 : vector<64x1xf32>
    %15 = math.rsqrt %14 : vector<64x1xf32>
    %16 = vector.broadcast %15 : vector<64x1xf32> to vector<64x48xf32>
    %17 = arith.mulf %9, %16 : vector<64x48xf32>
    %18 = arith.mulf %8, %17 : vector<64x48xf32>
    %cst_6 = arith.constant dense<0.000000e+00> : vector<64xf32>
    %19 = vector.multi_reduction <add>, %18, %cst_6 [1] : vector<64x48xf32> to vector<64xf32>
    %20 = vector.shape_cast %19 : vector<64xf32> to vector<64x1xf32>
    %c0_7 = arith.constant 0 : index
    %c0_8 = arith.constant 0 : index
    %21 = vector.load %arg4[%c0_7, %c0_8] : memref<64x1xf32, #tpu.memory_space<vmem>>, vector<64x1xf32>
    tpu.vector_store %arg4[%c0_7, %c0_8], %20 {strides = array<i32>} : memref<64x1xf32, #tpu.memory_space<vmem>>, vector<64x1xf32>,
    %cst_9 = arith.constant 0.000000e+00 : f32
    %22 = vector.broadcast %cst_9 : f32 to vector<64x80xf32>
    %23 = tpu.concatenate %8, %22 in 1 : vector<64x48xf32>, vector<64x80xf32> -> vector<64x128xf32>
    %24 = arith.truncf %23 : vector<64x128xf32> to vector<64x128xbf16>
    %c0_10 = arith.constant 0 : index
    %c0_11 = arith.constant 0 : index
    %25 = vector.load %arg3[%c0_10, %c0_11] : memref<64x128xbf16, #tpu.memory_space<vmem>>, vector<64x128xbf16>
    tpu.vector_store %arg3[%c0_10, %c0_11], %24 {strides = array<i32>} : memref<64x128xbf16, #tpu.memory_space<vmem>>, vector<64x128xbf16>,
    return
  }
  func.func @transform_0(%arg0: i32) -> (i32, i32) {
    %c0_i32 = arith.constant 0 : i32
    %c0_i32_0 = arith.constant 0 : i32
    return %arg0, %c0_i32 : i32, i32
  }
  func.func @transform_1(%arg0: i32) -> (i32, i32) {
    %c1_i32 = arith.constant 1 : i32
    %0 = arith.addi %arg0, %c1_i32 : i32
    %c2_i32 = arith.constant 2 : i32
    %c0_i32 = arith.constant 0 : i32
    %1 = arith.cmpi eq, %c2_i32, %c0_i32 : i32
    %c1_i32_0 = arith.constant 1 : i32
    %2 = arith.select %1, %c1_i32_0, %c2_i32 : i32
    %3 = arith.remsi %0, %2 : i32
    %c0_i32_1 = arith.constant 0 : i32
    %4 = arith.cmpi ne, %3, %c0_i32_1 : i32
    %c0_i32_2 = arith.constant 0 : i32
    %5 = arith.cmpi slt, %3, %c0_i32_2 : i32
    %c0_i32_3 = arith.constant 0 : i32
    %6 = arith.cmpi slt, %2, %c0_i32_3 : i32
    %7 = arith.xori %5, %6 : i1
    %8 = arith.andi %7, %4 : i1
    %9 = arith.addi %3, %2 : i32
    %10 = arith.select %8, %9, %3 : i32
    %c0_i32_4 = arith.constant 0 : i32
    %c0_i32_5 = arith.constant 0 : i32
    return %10, %c0_i32_4 : i32, i32
  }
  func.func @transform_2(%arg0: i32) -> (i32, i32) {
    %c0_i32 = arith.constant 0 : i32
    %c0_i32_0 = arith.constant 0 : i32
    return %arg0, %c0_i32 : i32, i32
  }
  func.func @transform_3(%arg0: i32) -> (i32, i32) {
    %c0_i32 = arith.constant 0 : i32
    %c0_i32_0 = arith.constant 0 : i32
    return %arg0, %c0_i32 : i32, i32
  }
}

</mosaic_0001>

<bundles_post_ra>
// kernel: tpu_custom_call.1
= control target key start
LH: loop header
LB: loop body
LE: loop exit
PB: predicated region body
PF: predicated region fallthrough
CT: control target
= control target key end

     0   :  { %9 = vsyncpa [#allocation3], 0  ;;  %s1112_s0 = inlined_call_operand.vmem [shape: f32[128,48], index: 0, kind: input, shape index: {}]   ;;  %s1113_s1 = inlined_call_operand.vmem [shape: f32[128,48], index: 1, kind: input, shape index: {}]   ;;  %s1114_s2 = inlined_call_operand.hbm [shape: bf16[128,128], index: 2, kind: output, shape index: {0}]   ;;  %s1115_s3 = inlined_call_operand.vmem [shape: f32[128,1], index: 3, kind: output, shape index: {1}]  }
   0x1   :  { %11 = vsyncpa [#allocation3 + $0x1], 0  ;;  %s862_s12 = smov 0   ;;  %s864_s13 = smov 0  }
   0x2   :  { %s866_s14 = smov 0   ;;  %s868_s15 = smov 0  }
   0x3 LB: > { %s883_s16 = sadd.s32 4294967295, %s837_s15   ;;  %s639_s17 = sadd.s32 4294967294, %s837_s15   ;;  %s837_s15 = sphi %s868_s15, %s1121_s15   ;;  %s833_s14 = sphi %s866_s14, %s1120_s14   ;;  %s829_s13 = sphi %s864_s13, %s1119_s13   ;;  %s825_s12 = sphi %s862_s12, %s1118_s12  }
   0x4   : > { %s887_s18 = sadd.s32 1, %s837_s15   ;;  %s102_s19 = sadd.s32 1, %s833_s14 }
   0x5   : > { %s99_s20 = ssub.s32 %s837_s15, %s887_s18  ;;  %p112_p0 = scmp.ne.s32.totalorder %s833_s14, %s829_s13 }
   0x6   : > { %p100_p1 = scmp.eq.s32.totalorder %s99_s20, 0  ;;  %p113_p2 = scmp.eq.s32.totalorder %s883_s16, 1 }
   0x7   : > { %p118_p3 = scmp.ne.s32.totalorder %s829_s13, %s825_s12  ;;  %p119_p4 = scmp.eq.s32.totalorder %s639_s17, 1 }
   0x8   : > { %s898_s21 = scalar_select %p100_p1, %s833_s14, %s102_s19  }
   0x9   : > { %p900_p5 = por %p113_p2, %p112_p0  ;;  %p904_p6 = por %p119_p4, %p118_p3 }
   0xa   : > { %p648_p7 = scmp.ge.s32.totalorder %s837_s15, 1  ;;  %p207_p8 = scmp.lt.s32.totalorder %s837_s15, 3 }
   0xc   : > { %p208_p9 = pnand %p648_p7, %p207_p8 }
   0xd   : > { %s650_s24 = sshll.u32 (!%p208_p9), %s883_s16, 3  ;;  %s260_s25 = sadd.s32 (!%p208_p9), 1, %s883_s16 }
   0xe   : > { %211 = sbr.rel (%p208_p9) target bundleno = 353 (0x161), region = 28  ;;  %p255_p10 = scmp.lt.s32.totalorder (!%p208_p9), %s650_s24, 15 }
   0xf   : > { %p261_p11 = scmp.lt.s32.totalorder (!%p208_p9), %s260_s25, 0  ;;  %s262_s26 = ssub.s32 (!%p208_p9), 0, %s260_s25 }
  0x10   : > { %s652_s27 = smin.u32 (!%p208_p9), %s262_s26, %s260_s25  ;;  %s244_s19 = sand.u32 (!%p208_p9), 1, %s829_s13  }
  0x11   : > { %s264_s29 = sand.u32 (!%p208_p9), 1, %s652_s27   ;;  %s649_s20 = sshll.u32 (!%p208_p9), %s244_s19, 5 }
  0x12   : > { %s265_s6 = ssub.s32 (!%p208_p9), 0, %s264_s29  ;;  %s1018_s25 = scalar_lea.vmem (!%p208_p9), [#allocation2], %s649_s20 }
  0x13   : > { %s1123_s24 = smov (!%p255_p10, %s650_s24), 15  ;;  %vm315_vm0 = vcmask 392192   ;;  %s1125_s6 = smov (!%p261_p11, %s265_s6), %s264_s29 }
  0x14   : > { %s651_s28 = sshll.u32 %s1123_s24, 3  ;;  %p654_p12 = scmp.lt.s32.totalorder %s1125_s6, 0 }
  0x15   : > { %s258_s5 = scalar_lea.vmem %s1112_s0, %s651_s28  ;;  %s271_s7 = sadd.s32 2, %s1125_s6 }
  0x16   : > { %v920_v0 = vld [vmem:[%s258_s5 + $0x10] sm:$0xff]  ;;  %v922_v1 = vld [vmem:[%s258_s5] sm:$0xff]  ;;  %v924_v2 = vld [vmem:[%s258_s5 + $0x18] sm:$0xff]  ;;  %s1127_s7 = smov (!%p654_p12, %s271_s7), %s1125_s6  ;;  %s680_s26 = sshll.u32 %s883_s16, 9 }
  0x17   : > { %v309_v3 = vmul.f32 %v920_v0, %v920_v0  ;;  %v307_v4 = vmul.f32 %v922_v1, %v922_v1  ;;  %v310_v5 = vmul.f32 %v924_v2, %v924_v2  ;;  %v932_v6 = vld [vmem:[%s258_s5 + $0x8] sm:$0xff]  ;;  %v938_v9 = vld [vmem:[%s258_s5 + $0x20] sm:$0xff]  ;;  %v948_v16 = vld [vmem:[%s258_s5 + $0x38] sm:$0xff]  ;;  %s655_s8 = sshll.u32 %s1127_s7, 3  ;;  %s536_s27 = sshll.u32 %s1018_s25, 4  ;;  %s1055_s27 = int_to_ptr.vmem [resolvable:$true] %s536_s27 }
  0x18   : > { %v308_v7 = vmul.f32 %v932_v6, %v932_v6  ;;  %v936_v8 = vld [vmem:[%s258_s5 + $0x28] sm:$0xff]  ;;  %v311_v15 = vmul.f32 %v938_v9, %v938_v9  ;;  %v950_v17 = vld [vmem:[%s258_s5 + $0x30] sm:$0xff]  ;;  %p274_p13 = scmp.lt.s32.totalorder %s655_s8, 15  ;;  %v314_v20 = vmul.f32 %v948_v16, %v948_v16  ;;  %s1053_s4 = scalar_lea.hbm %s1114_s2, %s680_s26 }
  0x19   : > { %v322_v10 = vsel %vm315_vm0, %v309_v3, 0.0  ;;  %v316_v11 = vsel %vm315_vm0, %v307_v4, 0.0  ;;  %v325_v12 = vsel %vm315_vm0, %v310_v5, 0.0  ;;  %v312_v14 = vmul.f32 %v936_v8, %v936_v8  ;;  %s1059_s5 = scalar_lea.sflag [#allocation3], %s244_s19  ;;  %s777_s6 = scalar_lea.vmem %s1055_s27, 512 }
  0x1a   : > { %323 = vadd.xlane.f32.xlu1 %v322_v10  ;;  %317 = vadd.xlane.f32.xlu0 %v316_v11  ;;  %v319_v13 = vsel %vm315_vm0, %v308_v7, 0.0  ;;  %v328_v19 = vsel %vm315_vm0, %v311_v15, 0.0  ;;  %v313_v21 = vmul.f32 %v950_v17, %v950_v17  ;;  %s1129_s8 = smov (!%p274_p13, %s655_s8), 15  ;;  %v337_v22 = vsel %vm315_vm0, %v314_v20, 0.0  ;;  %p778_p0 = scmp.ne.s32.totalorder %s1055_s27, %s777_s6 }
  0x1b   : > { %v331_v18 = vsel %vm315_vm0, %v312_v14, 0.0  ;;  %s656_s9 = sshll.u32 %s1129_s8, 3  ;;  %s839_s16 = smov [#allocation2]  }
  0x1c   : > { %s277_s17 = scalar_lea.vmem %s1113_s1, %s656_s9  ;;  %v334_v23 = vsel %vm315_vm0, %v313_v21, 0.0  ;;  %p779_p1 = pnand %p778_p0, %p900_p5 }
  0x1d   : > { %v963_v24 = vld [vmem:[%s277_s17 + $0x8] sm:$0xff]  ;;  %v965_v25 = vld [vmem:[%s277_s17] sm:$0xff]  ;;  %v971_v28 = vld [vmem:[%s277_s17 + $0x18] sm:$0xff]  ;;  %s781_s7 = sshll.u32 %s839_s16, 4  ;;  %s782_s7 = int_to_ptr.vmem [resolvable:$false] %s781_s7 }
  0x1e   : > { %326 = vadd.xlane.f32.xlu1 %v325_v12  ;;  %320 = vadd.xlane.f32.xlu0 %v319_v13  ;;  %v373_v26 = vmul.f32 %v963_v24, %v963_v24  ;;  %v372_v27 = vmul.f32 %v965_v25, %v965_v25  ;;  %v973_v29 = vld [vmem:[%s277_s17 + $0x10] sm:$0xff]  ;;  %v375_v32 = vmul.f32 %v971_v28, %v971_v28  ;;  %v981_v34 = vld [vmem:[%s277_s17 + $0x28] sm:$0xff]  ;;  %v983_v35 = vld [vmem:[%s277_s17 + $0x20] sm:$0xff]  ;;  %p780_p2 = pneg %p779_p1  ;;  %s783_s8 = scalar_lea.vmem %s782_s7, 1024 }
  0x1f   : > { %v374_v33 = vmul.f32 %v973_v29, %v973_v29  ;;  %v377_v38 = vmul.f32 %v981_v34, %v981_v34  ;;  %v376_v39 = vmul.f32 %v983_v35, %v983_v35  ;;  %v991_v40 = vld [vmem:[%s277_s17 + $0x38] sm:$0xff]  ;;  %v993_v41 = vld [vmem:[%s277_s17 + $0x30] sm:$0xff]  ;;  %p784_p3 = scmp.lt.s32.totalorder %s1055_s27, %s782_s7  ;;  %p785_p4 = scmp.lt.s32.totalorder %s783_s8, %s777_s6 }
  0x20   : > { %v383_v30 = vsel %vm315_vm0, %v373_v26, 0.0  ;;  %v380_v31 = vsel %vm315_vm0, %v372_v27, 0.0  ;;  %v389_v36 = vsel %vm315_vm0, %v375_v32, 0.0  ;;  %v379_v44 = vmul.f32 %v991_v40, %v991_v40 }
  0x21   : > { %v386_v37 = vsel %vm315_vm0, %v374_v33, 0.0  ;;  %v395_v42 = vsel %vm315_vm0, %v377_v38, 0.0  ;;  %v392_v43 = vsel %vm315_vm0, %v376_v39, 0.0  ;;  %v378_v45 = vmul.f32 %v993_v41, %v993_v41  ;;  %p786_p7 = por %p785_p4, %p784_p3 }
  0x22   : > { %332 = vadd.xlane.f32.xlu1 %v331_v18  ;;  %329 = vadd.xlane.f32.xlu0 %v328_v19  ;;  %v401_v46 = vsel %vm315_vm0, %v379_v44, 0.0 }
  0x23   : > { %v398_v47 = vsel %vm315_vm0, %v378_v45, 0.0  ;;  %p787_p8 = pnand %p786_p7, %p780_p2 }
  0x26   : > { %338 = vadd.xlane.f32.xlu1 %v337_v22  ;;  %335 = vadd.xlane.f32.xlu0 %v334_v23 }
  0x2a   : > { %384 = vadd.xlane.f32.xlu1 %v383_v30  ;;  %381 = vadd.xlane.f32.xlu0 %v380_v31 }
  0x2e   : > { %390 = vadd.xlane.f32.xlu1 %v389_v36  ;;  %387 = vadd.xlane.f32.xlu0 %v386_v37 }
  0x32   : > { %396 = vadd.xlane.f32.xlu1 %v395_v42  ;;  %393 = vadd.xlane.f32.xlu0 %v392_v43 }
  0x36   : > { %402 = vadd.xlane.f32.xlu1 %v401_v46  ;;  %399 = vadd.xlane.f32.xlu0 %v398_v47 }
  0xa3   : > { %v324_v48 = vpop.xlane.xlu1 %323  ;;  %v318_v49 = vpop.xlane.xlu0 %317 }
  0xa4   : > { %v342_v50 = vmax.f32 %v324_v48, 1e-24  ;;  %v340_v51 = vmax.f32 %v318_v49, 1e-24 }
  0xa6   : > { %745 = vrsqrt.f32 %v342_v50 }
  0xa7   : > { %747 = vrsqrt.f32 %v340_v51  ;;  %v327_v52 = vpop.xlane.xlu1 %326  ;;  %v321_v53 = vpop.xlane.xlu0 %320 }
  0xa8   : > { %v343_v54 = vmax.f32 %v327_v52, 1e-24  ;;  %v341_v55 = vmax.f32 %v321_v53, 1e-24 }
  0xaa   : > { %749 = vrsqrt.f32 %v343_v54 }
  0xab   : > { %751 = vrsqrt.f32 %v341_v55  ;;  %v333_v56 = vpop.xlane.xlu1 %332  ;;  %v330_v57 = vpop.xlane.xlu0 %329 }
  0xac   : > { %v345_v58 = vmax.f32 %v333_v56, 1e-24  ;;  %v344_v59 = vmax.f32 %v330_v57, 1e-24 }
  0xae   : > { %753 = vrsqrt.f32 %v345_v58 }
  0xaf   : > { %755 = vrsqrt.f32 %v344_v59  ;;  %v339_v60 = vpop.xlane.xlu1 %338  ;;  %v336_v61 = vpop.xlane.xlu0 %335 }
  0xb0   : > { %v347_v62 = vmax.f32 %v339_v60, 1e-24  ;;  %v346_v63 = vmax.f32 %v336_v61, 1e-24 }
  0xb2   : > { %757 = vrsqrt.f32 %v347_v62 }
  0xb3   : > { %v746_v3 = vpop.eup %745  ;;  %759 = vrsqrt.f32 %v346_v63  ;;  %v385_v4 = vpop.xlane.xlu1 %384 }
  0xb4   : > { %v382_v5 = vpop.xlane.xlu0 %381  ;;  %v748_v7 = vpop.eup %747  ;;  %v405_v10 = vmax.f32 %v385_v4, 1e-24  ;;  %v1005_v12 = vmul.f32 %v746_v3, %v920_v0 }
  0xb5   : > { %v404_v11 = vmax.f32 %v382_v5, 1e-24  ;;  %v356_v18 = vmul.f32 %v748_v7, %v922_v1 }
  0xb6   : > { %761 = vrsqrt.f32 %v405_v10  ;;  %v471_v0 = vsel %vm315_vm0, %v1005_v12, 0.0 }
  0xb7   : > { %v750_v13 = vpop.eup %749  ;;  %763 = vrsqrt.f32 %v404_v11  ;;  %v391_v14 = vpop.xlane.xlu1 %390  ;;  %v469_v32 = vsel %vm315_vm0, %v356_v18, 0.0 }
  0xb8   : > { %v388_v15 = vpop.xlane.xlu0 %387  ;;  %v752_v19 = vpop.eup %751  ;;  %v407_v20 = vmax.f32 %v391_v14, 1e-24  ;;  %v359_v22 = vmul.f32 %v750_v13, %v924_v2 }
  0xb9   : > { %v406_v21 = vmax.f32 %v388_v15, 1e-24  ;;  %v357_v23 = vmul.f32 %v752_v19, %v932_v6 }
  0xba   : > { %765 = vrsqrt.f32 %v407_v20  ;;  %v472_v26 = vsel %vm315_vm0, %v359_v22, 0.0 }
  0xbb   : > { %v754_v27 = vpop.eup %753  ;;  %767 = vrsqrt.f32 %v406_v21  ;;  %v397_v30 = vpop.xlane.xlu1 %396  ;;  %v470_v1 = vsel %vm315_vm0, %v357_v23, 0.0  ;;  %v689_v33 = vpack.c.bf16 %v472_v26, %v471_v0 }
  0xbc   : > { %v394_v31 = vpop.xlane.xlu0 %393  ;;  %v756_v36 = vpop.eup %755  ;;  %v409_v37 = vmax.f32 %v397_v30, 1e-24  ;;  %v684_v38 = vpack.c.bf16 %v470_v1, %v469_v32  ;;  %v361_v6 = vmul.f32 %v754_v27, %v936_v8 }
  0xbd   : > { %v408_v2 = vmax.f32 %v394_v31, 1e-24  ;;  %701 = vst [vmem:[%s1018_s25 + $0x8] sm:$0xff] %v689_v33   ;;  %v360_v39 = vmul.f32 %v756_v36, %v938_v9 }
  0xbe   : > { %769 = vrsqrt.f32 %v409_v37  ;;  %685 = vst [vmem:[%s1018_s25] sm:$0xff] %v684_v38   ;;  %v474_v42 = vsel %vm315_vm0, %v361_v6, 0.0 }
  0xbf   : > { %v758_v43 = vpop.eup %757  ;;  %771 = vrsqrt.f32 %v408_v2  ;;  %v403_v44 = vpop.xlane.xlu1 %402  ;;  %v473_v46 = vsel %vm315_vm0, %v360_v39, 0.0 }
  0xc0   : > { %v400_v45 = vpop.xlane.xlu0 %399  ;;  %v760_v47 = vpop.eup %759  ;;  %v411_v8 = vmax.f32 %v403_v44, 1e-24  ;;  %v694_v49 = vpack.c.bf16 %v474_v42, %v473_v46  ;;  %v363_v50 = vmul.f32 %v758_v43, %v948_v16 }
  0xc1   : > { %v410_v48 = vmax.f32 %v400_v45, 1e-24  ;;  %v362_v9 = vmul.f32 %v760_v47, %v950_v17 }
  0xc2   : > { %773 = vrsqrt.f32 %v411_v8  ;;  %702 = vst [vmem:[%s1018_s25 + $0x10] sm:$0xff] %v694_v49   ;;  %v476_v51 = vsel %vm315_vm0, %v363_v50, 0.0 }
  0xc3   : > { %v762_v52 = vpop.eup %761  ;;  %775 = vrsqrt.f32 %v410_v48  ;;  %v475_v53 = vsel %vm315_vm0, %v362_v9, 0.0 }
  0xc4   : > { %v764_v54 = vpop.eup %763  ;;  %v421_v55 = vmul.f32 %v762_v52, %v963_v24  ;;  %v699_v56 = vpack.c.bf16 %v476_v51, %v475_v53 }
  0xc5   : > { %v420_v57 = vmul.f32 %v764_v54, %v965_v25 }
  0xc6   : > { %v429_v58 = vmul.f32 %v421_v55, %v357_v23  ;;  %703 = vst [vmem:[%s1018_s25 + $0x18] sm:$0xff] %v699_v56  }
  0xc7   : > { %v766_v59 = vpop.eup %765  ;;  %v428_v16 = vmul.f32 %v420_v57, %v356_v18 }
  0xc8   : > { %v768_v60 = vpop.eup %767  ;;  %v439_v17 = vsel %vm315_vm0, %v429_v58, 0.0  ;;  %v423_v61 = vmul.f32 %v766_v59, %v971_v28 }
  0xc9   : > { %440 = vadd.xlane.f32.xlu1 %v439_v17  ;;  %v436_v62 = vsel %vm315_vm0, %v428_v16, 0.0  ;;  %v422_v63 = vmul.f32 %v768_v60, %v973_v29 }
  0xca   : > { %437 = vadd.xlane.f32.xlu0 %v436_v62  ;;  %v431_v3 = vmul.f32 %v423_v61, %v359_v22 }
  0xcb   : > { %v770_v24 = vpop.eup %769  ;;  %v430_v4 = vmul.f32 %v422_v63, %v1005_v12 }
  0xcc   : > { %v772_v25 = vpop.eup %771  ;;  %v445_v5 = vsel %vm315_vm0, %v431_v3, 0.0  ;;  %v425_v7 = vmul.f32 %v770_v24, %v981_v34 }
  0xcd   : > { %446 = vadd.xlane.f32.xlu1 %v445_v5  ;;  %v442_v10 = vsel %vm315_vm0, %v430_v4, 0.0  ;;  %v424_v28 = vmul.f32 %v772_v25, %v983_v35 }
  0xce   : > { %443 = vadd.xlane.f32.xlu0 %v442_v10  ;;  %v433_v11 = vmul.f32 %v425_v7, %v361_v6 }
  0xcf   : > { %v774_v13 = vpop.eup %773  ;;  %v432_v29 = vmul.f32 %v424_v28, %v360_v39 }
  0xd0   : > { %v776_v14 = vpop.eup %775  ;;  %v451_v15 = vsel %vm315_vm0, %v433_v11, 0.0  ;;  %v427_v12 = vmul.f32 %v774_v13, %v991_v40 }
  0xd1   : > { %452 = vadd.xlane.f32.xlu1 %v451_v15  ;;  %v448_v34 = vsel %vm315_vm0, %v432_v29, 0.0  ;;  %v426_v18 = vmul.f32 %v776_v14, %v993_v41 }
  0xd2   : > { %449 = vadd.xlane.f32.xlu0 %v448_v34  ;;  %v435_v35 = vmul.f32 %v427_v12, %v363_v50 }
  0xd3   : > { %v434_v19 = vmul.f32 %v426_v18, %v362_v9 }
  0xd4   : > { %v457_v20 = vsel %vm315_vm0, %v435_v35, 0.0 }
  0xd5   : > { %458 = vadd.xlane.f32.xlu1 %v457_v20  ;;  %v454_v21 = vsel %vm315_vm0, %v434_v19, 0.0 }
  0xd6   : > { %455 = vadd.xlane.f32.xlu0 %v454_v21 }
  0xd7   : > { %790 = shalt.err (!%p787_p8)
}
  0xd8   : > { %s791_s9 = scalar_lea.hbm %s1053_s4, 512  ;;  %s795_s17 = scalar_lea.hbm %s1114_s2, 1024 }
  0xd9   : > { %p792_p9 = scmp.ne.s32.totalorder %s1053_s4, %s791_s9  ;;  %p796_p12 = scmp.lt.s32.totalorder %s1053_s4, %s1114_s2 }
  0xda   : > { %p797_p13 = scmp.lt.s32.totalorder %s795_s17, %s791_s9 }
  0xdb   : > { %p793_p10 = pnand %p792_p9, %p900_p5 }
  0xdc   : > { %p798_p0 = por %p797_p13, %p796_p12 }
  0xdd   : > { %p794_p11 = pneg %p793_p10 }
  0xdf   : > { %p799_p1 = pnand %p798_p0, %p794_p11 }
  0xe1   : > { %802 = shalt.err (!%p799_p1)
}
  0xe2   : > { %s840_s25 = smov 64   ;;  %s841_s26 = smov 4   ;;  %vm460_vm1 = vcmask 7168  }
  0xe3   : > { %704 = dma.vmem_to_hbm [thread:$0]  (%p900_p5), %s1055_s27, 512, %s1053_s4, %s1059_s5, %s840_s25, %s840_s25, %s841_s26  }
  0xe4   : > { %s297_s6 = scalar_lea.vmem %s1115_s3, %s651_s28 }
 0x152   : > { %v441_v40 = vpop.xlane.xlu1 %440 }
 0x153   : > { %462 = vst.msk [vmem:[%s297_s6 + $0x8] sm:$0xff] %vm460_vm1, %v441_v40  ;;  %v438_v41 = vpop.xlane.xlu0 %437 }
 0x154   : > { %461 = vst.msk [vmem:[%s297_s6] sm:$0xff] %vm460_vm1, %v438_v41 }
 0x156   : > { %v447_v22 = vpop.xlane.xlu1 %446 }
 0x157   : > { %464 = vst.msk [vmem:[%s297_s6 + $0x18] sm:$0xff] %vm460_vm1, %v447_v22  ;;  %v444_v23 = vpop.xlane.xlu0 %443 }
 0x158   : > { %463 = vst.msk [vmem:[%s297_s6 + $0x10] sm:$0xff] %vm460_vm1, %v444_v23 }
 0x15a   : > { %v453_v26 = vpop.xlane.xlu1 %452 }
 0x15b   : > { %466 = vst.msk [vmem:[%s297_s6 + $0x28] sm:$0xff] %vm460_vm1, %v453_v26  ;;  %v450_v0 = vpop.xlane.xlu0 %449 }
 0x15c   : > { %465 = vst.msk [vmem:[%s297_s6 + $0x20] sm:$0xff] %vm460_vm1, %v450_v0 }
 0x15e   : > { %v459_v27 = vpop.xlane.xlu1 %458 }
 0x15f   : > { %468 = vst.msk [vmem:[%s297_s6 + $0x38] sm:$0xff] %vm460_vm1, %v459_v27  ;;  %v456_v30 = vpop.xlane.xlu0 %455 }
 0x160   : > { %467 = vst.msk [vmem:[%s297_s6 + $0x30] sm:$0xff] %vm460_vm1, %v456_v30 }
 0x161 PF: > { %p710_p5 = scmp.ge.s32.totalorder %s837_s15, 2  ;;  %s555_s22 = sand.u32 1, %s825_s12  }
 0x162   : > { %s556_s24 = scalar_lea.sflag [#allocation3], %s555_s22 }
 0x163   : > { %p707_p2 = pnand %p710_p5, %p904_p6 }
 0x165   : > { %p708_p3 = pneg %p707_p2 }
 0x167   : > { %820 = dma.done.wait (%p708_p3), %s556_s24, 512  }
 0x168   : > { %822 = vsyncadd (%p708_p3), %s556_s24, 4294966784  ;;  %p14_p4 = scmp.ge.s32.totalorder %s887_s18, 4   ;;  %s1118_s12 = smov %s829_s13 }
 0x169   : > { %s1119_s13 = smov %s833_s14  ;;  %s1120_s14 = smov %s898_s21 }
 0x16a   : > { %s1121_s15 = smov %s887_s18  ;;  %16 = sbr.rel (!%p14_p4) target bundleno = 3 (0x3), region = 78 }
 0x16f   :  { %569 = vsyncpa [#allocation3], 1 }
 0x170   :  { %571 = vsyncpa [#allocation3 + $0x1], 1 }

</bundles_post_ra>
